<compile_context>
chip_gen: v7x
topology: tpu7x:2x2x1
jax: 0.10.0
libtpu: 0.0.40
codegen_flags: <defaults>
</compile_context>

<pallas_src>
import math
import functools

import jax
import jax.numpy as jnp
from jax.experimental import pallas as pl
from jax.experimental.pallas import tpu as pltpu


# Sublane packing per itemsize: f32 -> 8 rows/vreg, bf16 -> 16, int8/fp8 -> 32.
_SUBLANE = {4: 8, 2: 16, 1: 32}

# Raised scoped-VMEM limit.  Budget (worst case, f32, 4 MiB x-tile):
#   2 x input tile (double-buffered)      8 MiB
#   2 x output tile                       8 MiB
#   ~3 tile-sized f32 temporaries        12 MiB   (x upcast, x*scale, y)
#   params / weight tile / VMEM scratch  <8 MiB   (fused path)
#   ------------------------------------------------
#   ~28-36 MiB -> 40 MiB limit: above v5e's 16 MiB default scope, below
#   v7x's 64 MiB physical VMEM (v5e/v6e physical is 128 MiB).
_VMEM_LIMIT = 40 * 1024 * 1024


def _divisors(n):
    ds, i = set(), 1
    while i * i <= n:
        if n % i == 0:
            ds.add(i)
            ds.add(n // i)
        i += 1
    return ds


def _choose_block_rows(rows, d, dtype, target_tile_bytes=4 << 20, min_blocks=2):
    """Pick the row-tile size `tm` (and a tiny alignment pad).

    `tm` is (a) a multiple of the dtype's sublane packing, (b) an exact
    divisor of the (minimally aligned) row count — so no full padded copy of x
    is ever materialised in the common case, (c) small enough that one tile is
    <= target_tile_bytes, and (d) small enough that the grid has >= min_blocks
    steps so both v7x TensorCores get work (no-op on single-TC v5e/v6e).
    """
    itemsize = jnp.dtype(dtype).itemsize
    sub = _SUBLANE.get(itemsize, 8)
    max_tm = max(sub, (target_tile_bytes // max(1, d * itemsize)) // sub * sub)
    if rows >= sub * min_blocks:
        cap = max(sub, (-(-rows // min_blocks)) // sub * sub)
        max_tm = min(max_tm, cap)
    pad = (-rows) % sub          # 0 whenever rows is already sublane-aligned
    padded = rows + pad
    tm = max(t for t in _divisors(padded) if t % sub == 0 and t <= max_tm)
    return tm, pad


def _choose_block_cols(n, max_tn=256):
    """Output-feature tile: lane-dense multiple of 128 when possible."""
    if n % 128 == 0:
        for t in (max_tn, 128):
            if n % t == 0:
                return t
        return 128
    return n   # full dim (satisfies the "equal full array dim" rule)


# --------------------------------------------------------------------------
# Standalone LayerNorm kernel (generic `fn` applied outside).
# --------------------------------------------------------------------------
def _layernorm_kernel(x_ref, g_ref, b_ref, o_ref, *, eps, inv_d):
    # x_ref/o_ref: (TM, D) row tile.  g_ref/b_ref: (1, D) resident params.
    # Single-pass moments + folded gamma keep the per-element VALU work low
    # (v7x suggestion) and avoid a full-tile centered temporary.  All stats
    # are accumulated in f32; var is clamped >= 0 (E[x^2]-E[x]^2 can go
    # slightly negative from rounding).
    x = x_ref[...].astype(jnp.float32)
    mean = jnp.sum(x, axis=-1, keepdims=True) * inv_d
    ex2 = jnp.sum(x * x, axis=-1, keepdims=True) * inv_d
    var = jnp.maximum(ex2 - mean * mean, 0.0)
    inv = jax.lax.rsqrt(var + eps)               # EUP rsqrt (free slot)
    scale = inv * g_ref[...]
    shift = b_ref[...] - mean * scale
    o_ref[...] = (x * scale + shift).astype(o_ref.dtype)


def layer_norm_pallas(x2, gamma, beta, eps=1e-5):
    """LayerNorm over the last dim.  x2: (rows, D); gamma/beta: (D,)."""
    rows, d = x2.shape
    tm, pad = _choose_block_rows(rows, d, x2.dtype)
    if pad:
        # TODO(synk): rare path (rows not sublane-aligned); in-kernel tail
        # masking would avoid this extra HBM copy of x / out.
        x2 = jnp.pad(x2, ((0, pad), (0, 0)))
    padded = rows + pad
    n_blocks = padded // tm

    g2 = gamma.reshape(1, d).astype(jnp.float32)
    b2 = beta.reshape(1, d).astype(jnp.float32)
    itemsize = x2.dtype.itemsize

    out = pl.pallas_call(
        functools.partial(_layernorm_kernel, eps=eps, inv_d=1.0 / d),
        out_shape=jax.ShapeDtypeStruct((padded, d), x2.dtype),
        grid_spec=pltpu.PrefetchScalarGridSpec(
            num_scalar_prefetch=0,
            grid=(n_blocks,),
            in_specs=[
                pl.BlockSpec((tm, d), lambda i: (i, 0)),   # x row tile
                pl.BlockSpec((1, d), lambda i: (0, 0)),    # gamma (resident)
                pl.BlockSpec((1, d), lambda i: (0, 0)),    # beta  (resident)
            ],
            out_specs=pl.BlockSpec((tm, d), lambda i: (i, 0)),
        ),
        compiler_params=pltpu.CompilerParams(
            dimension_semantics=("parallel",),          # v7x: 2 TCs share grid
            vmem_limit_bytes=_VMEM_LIMIT),
        cost_estimate=pl.CostEstimate(
            flops=7 * padded * d,
            transcendentals=padded,
            bytes_accessed=2 * padded * d * itemsize + 2 * d * 4),
    )(x2, g2, b2)

    if pad:
        out = out[:rows]
    return out


# --------------------------------------------------------------------------
# Fused LayerNorm + Linear kernel (fn == nn.Linear(dim, n_out)).
# --------------------------------------------------------------------------
def _prenorm_linear_kernel(x_ref, g_ref, b_ref, w_ref, bias_ref, o_ref,
                           normed_ref, *, eps, inv_d):
    # Grid (i, j): i tiles rows, j tiles output features.  The normalized row
    # tile is computed once per i (at j == 0) into VMEM scratch and re-used by
    # every output-column tile, so normalized activations never touch HBM.
    @pl.when(pl.program_id(1) == 0)
    def _():
        x = x_ref[...].astype(jnp.float32)
        mean = jnp.sum(x, axis=-1, keepdims=True) * inv_d
        ex2 = jnp.sum(x * x, axis=-1, keepdims=True) * inv_d
        var = jnp.maximum(ex2 - mean * mean, 0.0)
        inv = jax.lax.rsqrt(var + eps)
        scale = inv * g_ref[...]
        shift = b_ref[...] - mean * scale
        normed_ref[...] = (x * scale + shift).astype(normed_ref.dtype)

    acc = jnp.dot(normed_ref[...], w_ref[...],
                  preferred_element_type=jnp.float32)
    o_ref[...] = (acc + bias_ref[...]).astype(o_ref.dtype)


def pre_norm_linear_pallas(x2, gamma, beta, w, bias, eps=1e-5, out_dtype=None):
    """Fused LN(x2) @ w + bias.  x2: (rows, D); w: (D, N); bias: (N,)."""
    rows, d = x2.shape
    d_w, n = w.shape
    assert d_w == d, "weight input dim must match feature dim"
    out_dtype = out_dtype or x2.dtype
    tm, pad = _choose_block_rows(rows, d, x2.dtype, target_tile_bytes=2 << 20)
    if pad:
        # TODO(synk): rare path (rows not sublane-aligned).
        x2 = jnp.pad(x2, ((0, pad), (0, 0)))
    padded = rows + pad
    n_m = padded // tm
    tn = _choose_block_cols(n)
    n_n = n // tn

    g2 = gamma.reshape(1, d).astype(jnp.float32)
    b2 = beta.reshape(1, d).astype(jnp.float32)
    bias2 = bias.reshape(1, n).astype(jnp.float32)
    w_c = w.astype(x2.dtype)

    out = pl.pallas_call(
        functools.partial(_prenorm_linear_kernel, eps=eps, inv_d=1.0 / d),
        out_shape=jax.ShapeDtypeStruct((padded, n), out_dtype),
        grid_spec=pltpu.PrefetchScalarGridSpec(
            num_scalar_prefetch=0,
            grid=(n_m, n_n),
            in_specs=[
                pl.BlockSpec((tm, d), lambda i, j: (i, 0)),   # x (reused over j)
                pl.BlockSpec((1, d), lambda i, j: (0, 0)),    # gamma (resident)
                pl.BlockSpec((1, d), lambda i, j: (0, 0)),    # beta  (resident)
                pl.BlockSpec((d, tn), lambda i, j: (0, j)),   # weight column tile
                pl.BlockSpec((1, tn), lambda i, j: (0, j)),   # bias column tile
            ],
            out_specs=pl.BlockSpec((tm, tn), lambda i, j: (i, j)),
            scratch_shapes=[pltpu.VMEM((tm, d), x2.dtype)],   # normalized tile
        ),
        compiler_params=pltpu.CompilerParams(
            dimension_semantics=("parallel", "arbitrary"),
            vmem_limit_bytes=_VMEM_LIMIT),
        cost_estimate=pl.CostEstimate(
            flops=2 * padded * d * n + 7 * padded * d,
            transcendentals=padded,
            bytes_accessed=(padded * d * x2.dtype.itemsize
                            + n_m * d * n * w_c.dtype.itemsize
                            + padded * n * jnp.dtype(out_dtype).itemsize
                            + 2 * d * 4 + n * 4)),
    )(x2, g2, b2, w_c, bias2)

    if pad:
        out = out[:rows]
    return out


# --------------------------------------------------------------------------
# Module-level wrappers (PreNorm.forward).
# --------------------------------------------------------------------------
def pre_norm(x, gamma, beta, fn=lambda y: y, eps=1e-5):
    """PreNorm.forward: fn(LayerNorm(dim)(x)) for an arbitrary `fn`."""
    d = x.shape[-1]
    lead = x.shape[:-1]
    rows = int(math.prod(lead)) if lead else 1
    x2 = x.reshape(rows, d)
    normed = layer_norm_pallas(x2, gamma, beta, eps=eps).reshape(*lead, d)
    # TODO(synk): an arbitrary wrapped nn.Module `fn` stays a plain JAX
    # callable here; the common Linear case is fused in pre_norm_linear.
    return fn(normed)


def pre_norm_linear(x, gamma, beta, w, bias, eps=1e-5):
    """PreNorm.forward when fn == nn.Linear: fused LN + matmul kernel."""
    d = x.shape[-1]
    lead = x.shape[:-1]
    rows = int(math.prod(lead)) if lead else 1
    out = pre_norm_linear_pallas(x.reshape(rows, d), gamma, beta, w, bias,
                                 eps=eps)
    return out.reshape(*lead, w.shape[1])


if __name__ == "__main__":
    # Small shapes consistent with the module: tokens (B, N, dim).
    B, N, D = 2, 8, 32
    key = jax.random.PRNGKey(0)
    kx, kg, kb, kw, kbf = jax.random.split(key, 5)

    x = jax.random.normal(kx, (B, N, D), dtype=jnp.float32)
    gamma = 1.0 + 0.1 * jax.random.normal(kg, (D,), dtype=jnp.float32)
    beta = 0.1 * jax.random.normal(kb, (D,), dtype=jnp.float32)

    # Example wrapped `fn`: Linear(dim, dim).
    w_fn = jax.random.normal(kw, (D, D), dtype=jnp.float32) / math.sqrt(D)
    b_fn = 0.1 * jax.random.normal(kbf, (D,), dtype=jnp.float32)

    # Pure-JAX reference.
    eps = 1e-5
    mean = x.mean(-1, keepdims=True)
    var = ((x - mean) ** 2).mean(-1, keepdims=True)
    normed_ref = (x - mean) / jnp.sqrt(var + eps) * gamma + beta
    ref = normed_ref @ w_fn + b_fn

    # Fused path (fn == Linear): normalized tile stays in VMEM, feeds the MXU.
    out_fused = jax.block_until_ready(
        pre_norm_linear(x, gamma, beta, w_fn, b_fn, eps=eps))
    assert jnp.allclose(out_fused, ref, atol=3e-5, rtol=3e-5), "fused mismatch"

    # Generic path (arbitrary fn applied outside the kernel).
    fn = lambda y: y @ w_fn + b_fn
    out_gen = jax.block_until_ready(pre_norm(x, gamma, beta, fn=fn, eps=eps))
    assert jnp.allclose(out_gen, ref, atol=3e-5, rtol=3e-5), "generic mismatch"

    print("KERNEL_OK")
</pallas_src>

<mosaic_0001>
module attributes {stable_mosaic.version = 11 : i64} {
  func.func @_prenorm_linear_kernel(%arg0: i32, %arg1: i32, %arg2: memref<8x32xf32, #tpu.memory_space<vmem>>, %arg3: memref<1x32xf32, #tpu.memory_space<vmem>>, %arg4: memref<1x32xf32, #tpu.memory_space<vmem>>, %arg5: memref<32x32xf32, #tpu.memory_space<vmem>>, %arg6: memref<1x32xf32, #tpu.memory_space<vmem>>, %arg7: memref<8x32xf32, #tpu.memory_space<vmem>>, %arg8: memref<8x32xf32, #tpu.memory_space<vmem>>) attributes {dimension_semantics = [#tpu.dimension_semantics<parallel>, #tpu.dimension_semantics<arbitrary>], iteration_bounds = array<i64: 2, 1>, scalar_prefetch = 0 : i64, scratch_operands = 1 : i64, tpu.core_type = #tpu.core_type<tc>, window_params = [{transform_indices = @transform_0, window_bounds = array<i64: 8, 32>}, {pipeline_mode = #tpu.pipeline_mode<synchronous>, transform_indices = @transform_1, window_bounds = array<i64: 1, 32>}, {pipeline_mode = #tpu.pipeline_mode<synchronous>, transform_indices = @transform_2, window_bounds = array<i64: 1, 32>}, {transform_indices = @transform_3, window_bounds = array<i64: 32, 32>}, {transform_indices = @transform_4, window_bounds = array<i64: 1, 32>}, {transform_indices = @transform_5, window_bounds = array<i64: 8, 32>}]} {
    %c0_i32 = arith.constant 0 : i32
    %0 = arith.cmpi eq, %arg1, %c0_i32 : i32
    %1 = arith.extui %0 : i1 to i32
    %c0_i32_0 = arith.constant 0 : i32
    %2 = arith.cmpi ne, %1, %c0_i32_0 : i32
    scf.if %2 {
      %c0_8 = arith.constant 0 : index
      %c0_9 = arith.constant 0 : index
      %10 = vector.load %arg2[%c0_8, %c0_9] : memref<8x32xf32, #tpu.memory_space<vmem>>, vector<8x32xf32>
      %cst_10 = arith.constant dense<0.000000e+00> : vector<8xf32>
      %11 = vector.multi_reduction <add>, %10, %cst_10 [1] : vector<8x32xf32> to vector<8xf32>
      %12 = vector.shape_cast %11 : vector<8xf32> to vector<8x1xf32>
      %cst_11 = arith.constant 3.125000e-02 : f32
      %13 = vector.broadcast %cst_11 : f32 to vector<8x1xf32>
      %14 = arith.mulf %12, %13 : vector<8x1xf32>
      %15 = arith.mulf %10, %10 : vector<8x32xf32>
      %cst_12 = arith.constant dense<0.000000e+00> : vector<8xf32>
      %16 = vector.multi_reduction <add>, %15, %cst_12 [1] : vector<8x32xf32> to vector<8xf32>
      %17 = vector.shape_cast %16 : vector<8xf32> to vector<8x1xf32>
      %cst_13 = arith.constant 3.125000e-02 : f32
      %18 = vector.broadcast %cst_13 : f32 to vector<8x1xf32>
      %19 = arith.mulf %17, %18 : vector<8x1xf32>
      %20 = arith.mulf %14, %14 : vector<8x1xf32>
      %21 = arith.subf %19, %20 : vector<8x1xf32>
      %cst_14 = arith.constant 0.000000e+00 : f32
      %22 = vector.broadcast %cst_14 : f32 to vector<8x1xf32>
      %23 = arith.maximumf %21, %22 : vector<8x1xf32>
      %cst_15 = arith.constant 9.99999974E-6 : f32
      %24 = vector.broadcast %cst_15 : f32 to vector<8x1xf32>
      %25 = arith.addf %23, %24 : vector<8x1xf32>
      %26 = math.rsqrt %25 : vector<8x1xf32>
      %c0_16 = arith.constant 0 : index
      %c0_17 = arith.constant 0 : index
      %27 = vector.load %arg3[%c0_16, %c0_17] : memref<1x32xf32, #tpu.memory_space<vmem>>, vector<1x32xf32>
      %28 = vector.broadcast %26 : vector<8x1xf32> to vector<8x32xf32>
      %29 = vector.broadcast %27 : vector<1x32xf32> to vector<8x32xf32>
      %30 = arith.mulf %28, %29 : vector<8x32xf32>
      %c0_18 = arith.constant 0 : index
      %c0_19 = arith.constant 0 : index
      %31 = vector.load %arg4[%c0_18, %c0_19] : memref<1x32xf32, #tpu.memory_space<vmem>>, vector<1x32xf32>
      %32 = vector.broadcast %14 : vector<8x1xf32> to vector<8x32xf32>
      %33 = arith.mulf %32, %30 : vector<8x32xf32>
      %34 = vector.broadcast %31 : vector<1x32xf32> to vector<8x32xf32>
      %35 = arith.subf %34, %33 : vector<8x32xf32>
      %36 = arith.mulf %10, %30 : vector<8x32xf32>
      %37 = arith.addf %36, %35 : vector<8x32xf32>
      %c0_20 = arith.constant 0 : index
      %c0_21 = arith.constant 0 : index
      %38 = vector.load %arg8[%c0_20, %c0_21] : memref<8x32xf32, #tpu.memory_space<vmem>>, vector<8x32xf32>
      tpu.vector_store %arg8[%c0_20, %c0_21], %37 {strides = array<i32>} : memref<8x32xf32, #tpu.memory_space<vmem>>, vector<8x32xf32>,
    } else {
    }
    %c0 = arith.constant 0 : index
    %c0_1 = arith.constant 0 : index
    %3 = vector.load %arg8[%c0, %c0_1] : memref<8x32xf32, #tpu.memory_space<vmem>>, vector<8x32xf32>
    %c0_2 = arith.constant 0 : index
    %c0_3 = arith.constant 0 : index
    %4 = vector.load %arg5[%c0_2, %c0_3] : memref<32x32xf32, #tpu.memory_space<vmem>>, vector<32x32xf32>
    %cst = arith.constant dense<0.000000e+00> : vector<8x32xf32>
    %5 = tpu.matmul %3, %4, %cst {dimension_numbers = #tpu.dot_dimension_numbers<[1], [0], [0], [1], [0, 0, 1, 1], [], []>} : vector<8x32xf32>, vector<32x32xf32>, vector<8x32xf32> -> vector<8x32xf32>
    %c0_4 = arith.constant 0 : index
    %c0_5 = arith.constant 0 : index
    %6 = vector.load %arg6[%c0_4, %c0_5] : memref<1x32xf32, #tpu.memory_space<vmem>>, vector<1x32xf32>
    %7 = vector.broadcast %6 : vector<1x32xf32> to vector<8x32xf32>
    %8 = arith.addf %5, %7 : vector<8x32xf32>
    %c0_6 = arith.constant 0 : index
    %c0_7 = arith.constant 0 : index
    %9 = vector.load %arg7[%c0_6, %c0_7] : memref<8x32xf32, #tpu.memory_space<vmem>>, vector<8x32xf32>
    tpu.vector_store %arg7[%c0_6, %c0_7], %8 {strides = array<i32>} : memref<8x32xf32, #tpu.memory_space<vmem>>, vector<8x32xf32>,
    return
  }
  func.func @transform_0(%arg0: i32, %arg1: i32) -> (i32, i32) {
    %c0_i32 = arith.constant 0 : i32
    %c0_i32_0 = arith.constant 0 : i32
    return %arg0, %c0_i32 : i32, i32
  }
  func.func @transform_1(%arg0: i32, %arg1: i32) -> (i32, i32) {
    %c0_i32 = arith.constant 0 : i32
    %c0_i32_0 = arith.constant 0 : i32
    %c0_i32_1 = arith.constant 0 : i32
    return %c0_i32, %c0_i32_0 : i32, i32
  }
  func.func @transform_2(%arg0: i32, %arg1: i32) -> (i32, i32) {
    %c0_i32 = arith.constant 0 : i32
    %c0_i32_0 = arith.constant 0 : i32
    %c0_i32_1 = arith.constant 0 : i32
    return %c0_i32, %c0_i32_0 : i32, i32
  }
  func.func @transform_3(%arg0: i32, %arg1: i32) -> (i32, i32) {
    %c0_i32 = arith.constant 0 : i32
    %c0_i32_0 = arith.constant 0 : i32
    return %c0_i32, %arg1 : i32, i32
  }
  func.func @transform_4(%arg0: i32, %arg1: i32) -> (i32, i32) {
    %c0_i32 = arith.constant 0 : i32
    %c0_i32_0 = arith.constant 0 : i32
    return %c0_i32, %arg1 : i32, i32
  }
  func.func @transform_5(%arg0: i32, %arg1: i32) -> (i32, i32) {
    %c0_i32 = arith.constant 0 : i32
    return %arg0, %arg1 : i32, i32
  }
}

</mosaic_0001>

<bundles_post_ra>
// kernel: tpu_custom_call.1
= control target key start
LH: loop header
LB: loop body
LE: loop exit
PB: predicated region body
PF: predicated region fallthrough
CT: control target
= control target key end

     0   :  { %10 = vsyncpa [#allocation4], 0  ;;  %s1073_s0 = inlined_call_operand.hbm [shape: f32[16,32], index: 0, kind: input, shape index: {}]   ;;  %s1074_s1 = inlined_call_operand.vmem [shape: f32[1,32], index: 1, kind: input, shape index: {}]   ;;  %s1075_s2 = inlined_call_operand.vmem [shape: f32[1,32], index: 2, kind: input, shape index: {}]   ;;  %s1076_s3 = inlined_call_operand.hbm [shape: f32[32,32], index: 3, kind: input, shape index: {}]   ;;  %s1077_s4 = inlined_call_operand.vmem [shape: f32[1,32], index: 4, kind: input, shape index: {}]   ;;  %s1078_s5 = inlined_call_operand.hbm [shape: f32[16,32], index: 5, kind: output, shape index: {}]  }
   0x1   :  { %12 = vsyncpa [#allocation4 + $0x1], 0 }
   0x2   :  { %13 = vsyncpa [#allocation7], 0 }
   0x3   :  { %14 = vsyncpa [#allocation5], 0 }
   0x4   :  { %16 = vsyncpa [#allocation5 + $0x1], 0  ;;  %s841_s18 = smov 0   ;;  %s843_s19 = smov 0  }
   0x5   :  { %s845_s20 = smov 0   ;;  %s847_s21 = smov 0  }
   0x6   :  { %s849_s22 = smov 0   ;;  %s851_s23 = smov 0  }
   0x7 LB: > { %s535_s24 = sadd.s32 4294967295, %s801_s23   ;;  %s536_s25 = sadd.s32 4294967294, %s801_s23   ;;  %s801_s23 = sphi %s851_s23, %s22_s23   ;;  %s797_s22 = sphi %s849_s22, %s1102_s22   ;;  %s793_s21 = sphi %s847_s21, %s1101_s21   ;;  %s789_s20 = sphi %s845_s20, %s1100_s20   ;;  %s785_s19 = sphi %s843_s19, %s1099_s19   ;;  %s781_s18 = sphi %s841_s18, %s1098_s18  }
   0x8   : > { %p54_p0 = scmp.ne.s32.totalorder %s785_s19, %s781_s18  ;;  %p875_p1 = scmp.eq.s32.totalorder %s535_s24, 0 }
   0x9   : > { %p879_p2 = scmp.eq.s32.totalorder %s535_s24, 1  ;;  %p180_p3 = scmp.eq.s32.totalorder %s536_s25, 1 }
   0xa   : > { %s1083_s26 = scalar_select %p875_p1, 1, 0 }
   0xb   : > { %s1084_s27 = scalar_select %p879_p2, 1, 0 }
   0xc   : > { %p885_p4 = por %p875_p1, %p54_p0  ;;  %p537_p5 = scmp.ge.s32.totalorder %s801_s23, 1 }
   0xd   : > { %p890_p6 = por %p180_p3, %p54_p0  ;;  %p187_p7 = scmp.lt.s32.totalorder %s801_s23, 3 }
   0xe   : > { %s1085_s28 = scalar_select %p885_p4, 1, 0 }
   0xf   : > { %s1086_s29 = scalar_select %p890_p6, 1, 0 }
  0x10   : > { %p895_p8 = pnand %p537_p5, %p187_p7  ;;  %s803_s6 = smov [#allocation6]  }
  0x11   : > { %s207_s7 = sshll.u32 %s803_s6, 4  ;;  %s34_s9 = sadd.s32 1, %s797_s22  ;;  %s208_s7 = int_to_ptr.vmem [resolvable:$true] %s207_s7 }
  0x12   : > { %s1087_s30 = scalar_select %p895_p8, 1, 0 }
  0x13   : > { %p585_p9 = pneg %p895_p8  ;;  %s657_s12 = scalar_lea.hbm %s1076_s3, 512 }
  0x14   : > { %p658_p12 = scmp.ne.s32.totalorder %s1076_s3, %s657_s12  ;;  %p664_p5 = scmp.lt.u32.totalorder %s657_s12, %s1076_s3 }
  0x15   : > { %p904_p11 = pnand %p585_p9, %p875_p1 }
  0x17   : > { %p659_p13 = pneg %p904_p11 }
  0x19   : > { %p660_p0 = pnand %p659_p13, %p658_p12 }
  0x1b   : > { %p661_p3 = pneg %p660_p0 }
  0x1d   : > { %p666_p7 = pnand %p664_p5, %p661_p3 }
  0x1f   : > { %669 = shalt.err (!%p666_p7)
}
  0x20   : > { %s670_s17 = scalar_lea.vmem %s208_s7, 512  ;;  %p678_p1 = scmp.lt.s32.totalorder %s208_s7, %s208_s7 }
  0x21   : > { %p671_p9 = scmp.ne.s32.totalorder %s208_s7, %s670_s17  ;;  %p679_p4 = scmp.lt.s32.totalorder %s670_s17, %s670_s17 }
  0x23   : > { %p673_p10 = pnand %p671_p9, %p659_p13  ;;  %p680_p8 = por %p679_p4, %p678_p1 }
  0x25   : > { %p674_p6 = pneg %p673_p10 }
  0x27   : > { %p681_p2 = pnand %p680_p8, %p674_p6 }
  0x29   : > { %684 = shalt.err (!%p681_p2)
}
  0x2a   : > { %s804_s24 = smov 128   ;;  %s805_s25 = smov 8  }
  0x2b   : > { %588 = dma.hbm_to_vmem [thread:$0]  (!%p904_p11), %s1076_s3, 512, %s208_s7, [#allocation7], %s804_s24, %s804_s24, %s805_s25  }
  0x2c   : > { %p36_p1 = scmp.ge.s32.totalorder %s34_s9, 2  ;;  %s41_s11 = sadd.s32 1, %s789_s20 }
  0x2d   : > { %p48_p2 = scmp.ne.s32.totalorder %s789_s20, %s785_s19  ;;  %p49_p4 = scmp.eq.s32.totalorder %s801_s23, 0 }
  0x2e   : > { %s1104_s9 = smov (%p36_p1, %s34_s9), 0  ;;  %p1090_p8 = scmp.ne.s32.totalorder %s1084_s27, 0 }
  0x2f   : > { %p931_p6 = por %p49_p4, %p48_p2  ;;  %s38_s8 = ssub.s32 %s797_s22, %s1104_s9 }
  0x30   : > { %p937_p10 = por %p1090_p8, %p48_p2  ;;  %p598_p12 = scmp.lt.s32.totalorder %s801_s23, 2 }
  0x31   : > { %p39_p11 = scmp.eq.s32.totalorder %s38_s8, 0  ;;  %s227_s7 = sand.u32 1, %s789_s20  }
  0x32   : > { %s541_s14 = sshll.u32 %s227_s7, 3  ;;  %s542_s16 = sshll.u32 %s797_s22, 7 }
  0x33   : > { %s946_s15 = scalar_select %p39_p11, %s789_s20, %s41_s11  }
  0x34   : > { %s952_s25 = scalar_lea.hbm %s1073_s0, %s542_s16  ;;  %s231_s27 = scalar_lea.vmem [#allocation3], %s541_s14 }
  0x35   : > { %s238_s6 = sshll.u32 %s231_s27, 4  ;;  %p958_p13 = pnand %p598_p12, %p931_p6  ;;  %s954_s6 = int_to_ptr.vmem [resolvable:$true] %s238_s6 }
  0x36   : > { %s228_s11 = scalar_lea.sflag [#allocation4], %s227_s7  ;;  %s685_s8 = scalar_lea.hbm %s952_s25, 128 }
  0x37   : > { %p686_p0 = scmp.ne.s32.totalorder %s952_s25, %s685_s8  ;;  %p687_p3 = pneg %p958_p13 }
  0x38   : > { %s690_s17 = scalar_lea.hbm %s1073_s0, 256  ;;  %p691_p9 = scmp.lt.u32.totalorder %s952_s25, %s1073_s0 }
  0x39   : > { %p688_p5 = pnand %p687_p3, %p686_p0  ;;  %p692_p1 = scmp.lt.u32.totalorder %s690_s17, %s685_s8 }
  0x3a   : > { %p694_p4 = scmp.lt.u32.totalorder %s685_s8, %s952_s25 }
  0x3b   : > { %p689_p7 = pneg %p688_p5  ;;  %p693_p2 = por %p692_p1, %p691_p9 }
  0x3d   : > { %p695_p6 = por %p694_p4, %p693_p2 }
  0x3f   : > { %p696_p8 = pnand %p695_p6, %p689_p7 }
  0x41   : > { %699 = shalt.err (!%p696_p8)
}
  0x42   : > { %s700_s7 = scalar_lea.vmem %s954_s6, 128  ;;  %s806_s27 = smov [#allocation3]  }
  0x43   : > { %p701_p12 = scmp.ne.s32.totalorder %s954_s6, %s700_s7  ;;  %s705_s14 = sshll.u32 %s806_s27, 4  ;;  %s706_s14 = int_to_ptr.vmem [resolvable:$false] %s705_s14 }
  0x44   : > { %s707_s16 = scalar_lea.vmem %s706_s14, 256  ;;  %p708_p5 = scmp.lt.s32.totalorder %s954_s6, %s706_s14 }
  0x45   : > { %p703_p11 = pnand %p701_p12, %p687_p3  ;;  %p709_p9 = scmp.lt.s32.totalorder %s707_s16, %s700_s7 }
  0x47   : > { %p704_p0 = pneg %p703_p11  ;;  %p710_p1 = por %p709_p9, %p708_p5 }
  0x49   : > { %p711_p2 = pnand %p710_p1, %p704_p0 }
  0x4b   : > { %714 = shalt.err (!%p711_p2)
}
  0x4c   : > { %592 = dma.hbm_to_vmem [thread:$0]  (!%p958_p13), %s952_s25, 128, %s954_s6, %s228_s11  }
  0x4d   : > { %p1093_p7 = scmp.ne.s32.totalorder %s1087_s30, 0 }
  0x4e   : > { %s990_s8 = sand.u32 (!%p1093_p7), 1, %s785_s19   ;;  %p1094_p3 = scmp.ne.s32.totalorder (!%p1093_p7), %s1085_s28, 0 }
  0x4f   : > { %247 = sbr.rel (%p1093_p7) target bundleno = 501 (0x1f5), region = 40  ;;  %s544_s17 = sshll.u32 (!%p1093_p7), %s990_s8, 3 }
  0x50   : > { %s250_s12 = scalar_lea.sflag (!%p1093_p7), [#allocation4], %s990_s8  ;;  %s253_s24 = scalar_lea.vmem (!%p1093_p7), [#allocation3], %s544_s17 }
  0x56   : > { %768 = dma.done.wait (%p1094_p3), %s250_s12, 128  }
  0x57   : > { %770 = vsyncadd (%p1094_p3), %s250_s12, 4294967168  ;;  %p1095_p13 = scmp.ne.s32.totalorder %s1083_s26, 0 }
  0x59   : > { %772 = dma.done.wait (%p1095_p13), [#allocation7], 512  }
  0x5a   : > { %774 = vsyncadd (%p1095_p13), [#allocation7], 4294966784  ;;  %vm295_vm0 = vcmask 261120   ;;  %v294_v0 = vld [vmem:[%s253_s24] sm:$0xff]  ;;  %v331_v4 = vld [vmem:[#allocation6] sm:$0xff]  ;;  %v807_v7 = vmov 0.0|0.0  }
  0x5b   : > { %v296_v1 = vsel %vm295_vm0, %v294_v0, 0.0  ;;  %v300_v2 = vmul.f32 %v294_v0, %v294_v0  ;;  %v332_v5 = vld [vmem:[#allocation6 + $0x8] sm:$0xff]  ;;  %571 = vmatprep.subr.bf16.mxu0 %v807_v7  ;;  %v333_v8 = vld [vmem:[#allocation6 + $0x10] sm:$0xff]  ;;  %v334_v9 = vld [vmem:[#allocation6 + $0x18] sm:$0xff]  ;;  %vm808_vm1 = vmmov 0   ;;  %v809_v11 = vmov 0.0  }
  0x5c   : > { %297 = vadd.xlane.f32.xlu0 %v296_v1  ;;  %v572_v6 = vpack.c.bf16 %v332_v5, %v331_v4  ;;  %v575_v10 = vpack.c.bf16 %v334_v9, %v333_v8  ;;  %568 = vmatprep.mubr.msk.f32.mxu0 %vm808_vm1, %v809_v11  ;;  %v547_v20 = vld [vmem:[%s1074_s1] ss:$0 sm:$0xff]  ;;  %s552_s11 = sshll.u32 %s793_s21, 7  ;;  %s286_s7 = scalar_lea.vmem [#allocation8], %s544_s17 }
  0x5d   : > { %v301_v3 = vsel %vm295_vm0, %v300_v2, 0.0  ;;  %v548_v23 = vld [vmem:[%s1075_s2] ss:$0 sm:$0xff]  ;;  %s432_s27 = sshll.u32 %s286_s7, 4  ;;  %s1023_s12 = scalar_lea.hbm %s1078_s5, %s552_s11  ;;  %s1025_s27 = int_to_ptr.vmem [resolvable:$true] %s432_s27 }
  0x5e   : > { %573 = vmatpush3.bf16.msra.mxu0 %v572_v6  ;;  %v549_v29 = vld [vmem:[%s1077_s4] ss:$0 sm:$0xff]  ;;  %s418_s24 = scalar_lea.sflag [#allocation5], %s990_s8  ;;  %s715_s21 = scalar_lea.vmem %s1025_s27, 128 }
  0x5f   : > { %574 = vmatprep.subr.bf16.mxu0 %v807_v7  ;;  %p716_p4 = scmp.ne.s32.totalorder %s1025_s27, %s715_s21  ;;  %s810_s17 = smov [#allocation8]  }
  0x60   : > { %302 = vadd.xlane.f32.xlu0 %v301_v3  ;;  %s719_s26 = sshll.u32 %s810_s17, 4  ;;  %s720_s26 = int_to_ptr.vmem [resolvable:$false] %s719_s26 }
  0x61   : > { %p717_p6 = pnand %p716_p4, %p937_p10  ;;  %s721_s28 = scalar_lea.vmem %s720_s26, 256 }
  0x62   : > { %576 = vmatpush3.bf16.msra.mxu0 %v575_v10  ;;  %p722_p12 = scmp.lt.s32.totalorder %s1025_s27, %s720_s26  ;;  %p723_p11 = scmp.lt.s32.totalorder %s721_s28, %s715_s21 }
  0x63   : > { %p718_p8 = pneg %p717_p6 }
  0x64   : > { %p724_p0 = por %p723_p11, %p722_p12 }
  0x66   : > { %p725_p5 = pnand %p724_p0, %p718_p8 }
  0xe9   : > { %v298_v12 = vpop.xlane.xlu0 %297 }
  0xea   : > { %v299_v13 = vmul.f32 0.03125, %v298_v12 }
  0xec   : > { %v305_v15 = vmul.f32 %v299_v13, %v299_v13 }
  0xed   : > { %v303_v14 = vpop.xlane.xlu0 %302 }
  0xee   : > { %v304_v16 = vmul.f32 0.03125, %v303_v14 }
  0xf0   : > { %v306_v17 = vsub.f32 %v304_v16, %v305_v15 }
  0xf2   : > { %v307_v18 = vmax.f32 %v306_v17, 0.0 }
  0xf4   : > { %v308_v19 = vadd.f32 1e-05, %v307_v18 }
  0xf6   : > { %655 = vrsqrt.f32 %v308_v19 }
 0x100   : > { %v656_v21 = vpop.eup %655 }
 0x101   : > { %v317_v22 = vmul.f32 %v656_v21, %v547_v20 }
 0x103   : > { %v319_v24 = vmul.f32 %v317_v22, %v299_v13  ;;  %v327_v26 = vmul.f32 %v317_v22, %v294_v0 }
 0x105   : > { %v326_v25 = vsub.f32 %v548_v23, %v319_v24 }
 0x107   : > { %v328_v27 = vadd.f32 %v327_v26, %v326_v25 }
 0x109   : > { %329 = vst.msk [vmem:[#allocation2] sm:$0xff] %vm295_vm0, %v328_v27 }
 0x110   : > { %v330_v28 = vld [vmem:[#allocation2] sm:$0xff] }
 0x111   : > { %569 = vmatmul.mubr.msk.f32.vlgmr.msra.gmra.mrb[0].mxu0 %vm295_vm0, %v330_v28 }
 0x1e4   : > { %v412_v30 = vpop.f32.mrb[0].mxu0 }
 0x1e5   : > { %v413_v31 = vadd.f32 %v549_v29, %v412_v30  ;;  %v570_v32 = vpop.f32.mrb[1].mxu0 }
 0x1e7   : > { %416 = vst.msk [vmem:[%s286_s7] sm:$0xff] %vm295_vm0, %v413_v31 }
 0x1e8   : > { %728 = shalt.err (!%p725_p5)
}
 0x1e9   : > { %s729_s8 = scalar_lea.hbm %s1023_s12, 128  ;;  %s733_s6 = scalar_lea.hbm %s1078_s5, 256 }
 0x1ea   : > { %p730_p9 = scmp.ne.s32.totalorder %s1023_s12, %s729_s8  ;;  %p734_p7 = scmp.lt.u32.totalorder %s1023_s12, %s1078_s5 }
 0x1eb   : > { %p735_p3 = scmp.lt.u32.totalorder %s733_s6, %s729_s8  ;;  %p737_p4 = scmp.lt.u32.totalorder %s729_s8, %s1023_s12 }
 0x1ec   : > { %p731_p1 = pnand %p730_p9, %p937_p10 }
 0x1ed   : > { %p736_p13 = por %p735_p3, %p734_p7 }
 0x1ee   : > { %p732_p2 = pneg %p731_p1 }
 0x1ef   : > { %p738_p6 = por %p737_p4, %p736_p13 }
 0x1f1   : > { %p739_p8 = pnand %p738_p6, %p732_p2 }
 0x1f3   : > { %742 = shalt.err (!%p739_p8)
}
 0x1f4   : > { %583 = dma.vmem_to_hbm [thread:$0]  (%p937_p10), %s1025_s27, 128, %s1023_s12, %s418_s24  }
 0x1f5 PF: > { %s444_s7 = sand.u32 1, %s781_s18   ;;  %p1096_p12 = scmp.ne.s32.totalorder %s1086_s29, 0 }
 0x1f6   : > { %p1097_p11 = scmp.ge.s32.totalorder %s801_s23, 2  ;;  %s445_s14 = scalar_lea.sflag [#allocation5], %s444_s7 }
 0x1f8   : > { %p594_p0 = pnand %p1097_p11, %p1096_p12 }
 0x1fa   : > { %776 = dma.done.wait (!%p594_p0), %s445_s14, 128  }
 0x1fb   : > { %778 = vsyncadd (!%p594_p0), %s445_s14, 4294967168  ;;  %s22_s23 = sadd.s32 1, %s801_s23   ;;  %s1098_s18 = smov %s785_s19 }
 0x1fc   : > { %p19_p5 = scmp.ge.s32.totalorder %s22_s23, 4   ;;  %s1099_s19 = smov %s789_s20 }
 0x1fd   : > { %s1100_s20 = smov %s946_s15  ;;  %s1101_s21 = smov %s797_s22 }
 0x1fe   : > { %s1102_s22 = smov %s1104_s9  ;;  %21 = sbr.rel (!%p19_p5) target bundleno = 7 (0x7), region = 97 }
 0x205   :  { %450 = vsyncpa [#allocation4], 1 }
 0x206   :  { %452 = vsyncpa [#allocation4 + $0x1], 1 }
 0x207   :  { %453 = vsyncpa [#allocation7], 1 }
 0x208   :  { %454 = vsyncpa [#allocation5], 1 }
 0x209   :  { %456 = vsyncpa [#allocation5 + $0x1], 1 }

</bundles_post_ra>
